<compile_context>
chip_gen: v5e
topology: v5e:2x2
jax: 0.10.0
libtpu: 0.0.40
codegen_flags: <defaults>
</compile_context>

<pallas_src>
import functools

import jax
import jax.numpy as jnp
from jax.experimental import pallas as pl
from jax.experimental.pallas import tpu as pltpu


def _round_up(x, m):
    return ((x + m - 1) // m) * m


def _pad2d(a, rows, cols):
    return jnp.pad(a, ((0, rows - a.shape[0]), (0, cols - a.shape[1])))


def _mlp_kernel(x_ref, w1_ref, b1_ref, w2_ref, b2_ref, w3_ref, b3_ref,
                wo_ref, bo_ref, o_ref):
    # x / weights are bf16 (MXU-native); accumulation + elementwise are f32.
    x = x_ref[...]

    h = jnp.dot(x, w1_ref[...], preferred_element_type=jnp.float32) + b1_ref[...]
    h = jax.nn.sigmoid(h).astype(jnp.bfloat16)

    h = jnp.dot(h, w2_ref[...], preferred_element_type=jnp.float32) + b2_ref[...]
    h = jax.nn.sigmoid(h).astype(jnp.bfloat16)

    h = jnp.dot(h, w3_ref[...], preferred_element_type=jnp.float32) + b3_ref[...]
    h = jax.nn.sigmoid(h).astype(jnp.bfloat16)

    o_ref[...] = (jnp.dot(h, wo_ref[...], preferred_element_type=jnp.float32)
                  + bo_ref[...])


@functools.partial(jax.jit, static_argnames=("tile_b",))
def reg_model_forward(x, params, tile_b=256):
    """Pallas forward pass of reg_model.

    x: (B, N_input) float32
    params: dict w1,b1,w2,b2,w3,b3,wo,bo in PyTorch nn.Linear layout
            (W: (out_features, in_features), b: (1, out_features)).
    """
    w1, b1 = params["w1"], params["b1"]
    w2, b2 = params["w2"], params["b2"]
    w3, b3 = params["w3"], params["b3"]
    wo, bo = params["wo"], params["bo"]

    B, n_input = x.shape
    n_h1, n_h2, n_h3, n_out = w1.shape[0], w2.shape[0], w3.shape[0], wo.shape[0]

    # Lane-pad every feature dim to a multiple of 128.
    IN_P = _round_up(n_input, 128)
    H1_P = _round_up(n_h1, 128)
    H2_P = _round_up(n_h2, 128)
    H3_P = _round_up(n_h3, 128)
    OUT_P = _round_up(n_out, 128)

    # Batch tiling: sublane-aligned (multiple of 8), capped at tile_b rows.
    TILE_B = min(tile_b, _round_up(B, 8))
    B_P = _round_up(B, TILE_B)

    # Pre-transpose to (in, out), zero-pad, and downcast MXU operands to bf16.
    w1_t = _pad2d(w1.T, IN_P, H1_P).astype(jnp.bfloat16)
    w2_t = _pad2d(w2.T, H1_P, H2_P).astype(jnp.bfloat16)
    w3_t = _pad2d(w3.T, H2_P, H3_P).astype(jnp.bfloat16)
    wo_t = _pad2d(wo.T, H3_P, OUT_P).astype(jnp.bfloat16)

    b1_p = _pad2d(b1.reshape(1, -1).astype(jnp.float32), 1, H1_P)
    b2_p = _pad2d(b2.reshape(1, -1).astype(jnp.float32), 1, H2_P)
    b3_p = _pad2d(b3.reshape(1, -1).astype(jnp.float32), 1, H3_P)
    bo_p = _pad2d(bo.reshape(1, -1).astype(jnp.float32), 1, OUT_P)

    x_p = _pad2d(x, B_P, IN_P).astype(jnp.bfloat16)

    grid = (B_P // TILE_B,)

    def resident(shape):
        # Weights / biases: same block every grid step -> stays VMEM-resident.
        return pl.BlockSpec(shape, lambda i: (0, 0))

    out_padded = pl.pallas_call(
        _mlp_kernel,
        out_shape=jax.ShapeDtypeStruct((B_P, OUT_P), jnp.float32),
        grid=grid,
        in_specs=[
            pl.BlockSpec((TILE_B, IN_P), lambda i: (i, 0)),  # x tile (pipelined)
            resident((IN_P, H1_P)), resident((1, H1_P)),
            resident((H1_P, H2_P)), resident((1, H2_P)),
            resident((H2_P, H3_P)), resident((1, H3_P)),
            resident((H3_P, OUT_P)), resident((1, OUT_P)),
        ],
        out_specs=pl.BlockSpec((TILE_B, OUT_P), lambda i: (i, 0)),
        compiler_params=pltpu.CompilerParams(
            dimension_semantics=("parallel",)),
    )(x_p, w1_t, b1_p, w2_t, b2_p, w3_t, b3_p, wo_t, bo_p)

    return out_padded[:B, :n_out]


def init_params(key, n_input, n_h1, n_h2, n_h3, n_out):
    """Deterministic parameter init (PyTorch Linear shapes: W is (out, in))."""
    ks = jax.random.split(key, 8)

    def lin(kw, kb, fan_in, fan_out):
        bound = 1.0 / jnp.sqrt(fan_in)
        w = jax.random.uniform(kw, (fan_out, fan_in), jnp.float32, -bound, bound)
        b = jax.random.uniform(kb, (1, fan_out), jnp.float32, -bound, bound)
        return w, b

    w1, b1 = lin(ks[0], ks[1], n_input, n_h1)
    w2, b2 = lin(ks[2], ks[3], n_h1, n_h2)
    w3, b3 = lin(ks[4], ks[5], n_h2, n_h3)
    wo, bo = lin(ks[6], ks[7], n_h3, n_out)
    return dict(w1=w1, b1=b1, w2=w2, b2=b2, w3=w3, b3=b3, wo=wo, bo=bo)


def reg_model_reference(x, p):
    """Pure-JAX f32 reference of the PyTorch forward for correctness check."""
    h = jax.nn.sigmoid(x @ p["w1"].T + p["b1"])
    h = jax.nn.sigmoid(h @ p["w2"].T + p["b2"])
    h = jax.nn.sigmoid(h @ p["w3"].T + p["b3"])
    return h @ p["wo"].T + p["bo"]


if __name__ == "__main__":
    # Small shapes consistent with reg_model(N_input, N_h1, N_h2, N_h3, N_out).
    B, N_input, N_h1, N_h2, N_h3, N_out = 8, 32, 64, 64, 32, 1

    key = jax.random.PRNGKey(0)
    k_x, k_p = jax.random.split(key)

    x = jax.random.normal(k_x, (B, N_input), dtype=jnp.float32)
    params = init_params(k_p, N_input, N_h1, N_h2, N_h3, N_out)

    out = reg_model_forward(x, params)
    out = jax.block_until_ready(out)

    ref = reg_model_reference(x, params)
    assert out.shape == (B, N_out), out.shape
    # bf16 MXU inputs with f32 accumulation -> loosened tolerance vs f32 reference.
    assert jnp.allclose(out, ref, atol=3e-2, rtol=3e-2), (
        "mismatch vs reference: max abs diff = "
        f"{float(jnp.max(jnp.abs(out - ref)))}")

    print("KERNEL_OK")
</pallas_src>

<mosaic_0001>
module attributes {stable_mosaic.version = 11 : i64} {
  func.func @_mlp_kernel(%arg0: i32, %arg1: memref<8x128xbf16, #tpu.memory_space<vmem>>, %arg2: memref<128x128xbf16, #tpu.memory_space<vmem>>, %arg3: memref<1x128xf32, #tpu.memory_space<vmem>>, %arg4: memref<128x128xbf16, #tpu.memory_space<vmem>>, %arg5: memref<1x128xf32, #tpu.memory_space<vmem>>, %arg6: memref<128x128xbf16, #tpu.memory_space<vmem>>, %arg7: memref<1x128xf32, #tpu.memory_space<vmem>>, %arg8: memref<128x128xbf16, #tpu.memory_space<vmem>>, %arg9: memref<1x128xf32, #tpu.memory_space<vmem>>, %arg10: memref<8x128xf32, #tpu.memory_space<vmem>>) attributes {dimension_semantics = [#tpu.dimension_semantics<parallel>], iteration_bounds = array<i64: 1>, scalar_prefetch = 0 : i64, scratch_operands = 0 : i64, tpu.core_type = #tpu.core_type<tc>, window_params = [{transform_indices = @transform_0, window_bounds = array<i64: 8, 128>}, {pipeline_mode = #tpu.pipeline_mode<synchronous>, transform_indices = @transform_1, window_bounds = array<i64: 128, 128>}, {pipeline_mode = #tpu.pipeline_mode<synchronous>, transform_indices = @transform_2, window_bounds = array<i64: 1, 128>}, {pipeline_mode = #tpu.pipeline_mode<synchronous>, transform_indices = @transform_3, window_bounds = array<i64: 128, 128>}, {pipeline_mode = #tpu.pipeline_mode<synchronous>, transform_indices = @transform_4, window_bounds = array<i64: 1, 128>}, {pipeline_mode = #tpu.pipeline_mode<synchronous>, transform_indices = @transform_5, window_bounds = array<i64: 128, 128>}, {pipeline_mode = #tpu.pipeline_mode<synchronous>, transform_indices = @transform_6, window_bounds = array<i64: 1, 128>}, {pipeline_mode = #tpu.pipeline_mode<synchronous>, transform_indices = @transform_7, window_bounds = array<i64: 128, 128>}, {pipeline_mode = #tpu.pipeline_mode<synchronous>, transform_indices = @transform_8, window_bounds = array<i64: 1, 128>}, {transform_indices = @transform_9, window_bounds = array<i64: 8, 128>}]} {
    %c0 = arith.constant 0 : index
    %c0_0 = arith.constant 0 : index
    %0 = vector.load %arg1[%c0, %c0_0] : memref<8x128xbf16, #tpu.memory_space<vmem>>, vector<8x128xbf16>
    %c0_1 = arith.constant 0 : index
    %c0_2 = arith.constant 0 : index
    %1 = vector.load %arg2[%c0_1, %c0_2] : memref<128x128xbf16, #tpu.memory_space<vmem>>, vector<128x128xbf16>
    %cst = arith.constant dense<0.000000e+00> : vector<8x128xf32>
    %2 = tpu.matmul %0, %1, %cst {dimension_numbers = #tpu.dot_dimension_numbers<[1], [0], [0], [1], [0, 0, 1, 1], [], []>} : vector<8x128xbf16>, vector<128x128xbf16>, vector<8x128xf32> -> vector<8x128xf32>
    %c0_3 = arith.constant 0 : index
    %c0_4 = arith.constant 0 : index
    %3 = vector.load %arg3[%c0_3, %c0_4] : memref<1x128xf32, #tpu.memory_space<vmem>>, vector<1x128xf32>
    %4 = vector.broadcast %3 : vector<1x128xf32> to vector<8x128xf32>
    %5 = arith.addf %2, %4 : vector<8x128xf32>
    %6 = arith.negf %5 : vector<8x128xf32>
    %7 = math.exp %6 : vector<8x128xf32>
    %cst_5 = arith.constant 1.000000e+00 : f32
    %8 = vector.broadcast %cst_5 : f32 to vector<8x128xf32>
    %9 = arith.addf %8, %7 : vector<8x128xf32>
    %10 = arith.divf %8, %9 : vector<8x128xf32>
    %11 = arith.truncf %10 : vector<8x128xf32> to vector<8x128xbf16>
    %c0_6 = arith.constant 0 : index
    %c0_7 = arith.constant 0 : index
    %12 = vector.load %arg4[%c0_6, %c0_7] : memref<128x128xbf16, #tpu.memory_space<vmem>>, vector<128x128xbf16>
    %cst_8 = arith.constant dense<0.000000e+00> : vector<8x128xf32>
    %13 = tpu.matmul %11, %12, %cst_8 {dimension_numbers = #tpu.dot_dimension_numbers<[1], [0], [0], [1], [0, 0, 1, 1], [], []>} : vector<8x128xbf16>, vector<128x128xbf16>, vector<8x128xf32> -> vector<8x128xf32>
    %c0_9 = arith.constant 0 : index
    %c0_10 = arith.constant 0 : index
    %14 = vector.load %arg5[%c0_9, %c0_10] : memref<1x128xf32, #tpu.memory_space<vmem>>, vector<1x128xf32>
    %15 = vector.broadcast %14 : vector<1x128xf32> to vector<8x128xf32>
    %16 = arith.addf %13, %15 : vector<8x128xf32>
    %17 = arith.negf %16 : vector<8x128xf32>
    %18 = math.exp %17 : vector<8x128xf32>
    %cst_11 = arith.constant 1.000000e+00 : f32
    %19 = vector.broadcast %cst_11 : f32 to vector<8x128xf32>
    %20 = arith.addf %19, %18 : vector<8x128xf32>
    %21 = arith.divf %19, %20 : vector<8x128xf32>
    %22 = arith.truncf %21 : vector<8x128xf32> to vector<8x128xbf16>
    %c0_12 = arith.constant 0 : index
    %c0_13 = arith.constant 0 : index
    %23 = vector.load %arg6[%c0_12, %c0_13] : memref<128x128xbf16, #tpu.memory_space<vmem>>, vector<128x128xbf16>
    %cst_14 = arith.constant dense<0.000000e+00> : vector<8x128xf32>
    %24 = tpu.matmul %22, %23, %cst_14 {dimension_numbers = #tpu.dot_dimension_numbers<[1], [0], [0], [1], [0, 0, 1, 1], [], []>} : vector<8x128xbf16>, vector<128x128xbf16>, vector<8x128xf32> -> vector<8x128xf32>
    %c0_15 = arith.constant 0 : index
    %c0_16 = arith.constant 0 : index
    %25 = vector.load %arg7[%c0_15, %c0_16] : memref<1x128xf32, #tpu.memory_space<vmem>>, vector<1x128xf32>
    %26 = vector.broadcast %25 : vector<1x128xf32> to vector<8x128xf32>
    %27 = arith.addf %24, %26 : vector<8x128xf32>
    %28 = arith.negf %27 : vector<8x128xf32>
    %29 = math.exp %28 : vector<8x128xf32>
    %cst_17 = arith.constant 1.000000e+00 : f32
    %30 = vector.broadcast %cst_17 : f32 to vector<8x128xf32>
    %31 = arith.addf %30, %29 : vector<8x128xf32>
    %32 = arith.divf %30, %31 : vector<8x128xf32>
    %33 = arith.truncf %32 : vector<8x128xf32> to vector<8x128xbf16>
    %c0_18 = arith.constant 0 : index
    %c0_19 = arith.constant 0 : index
    %34 = vector.load %arg8[%c0_18, %c0_19] : memref<128x128xbf16, #tpu.memory_space<vmem>>, vector<128x128xbf16>
    %cst_20 = arith.constant dense<0.000000e+00> : vector<8x128xf32>
    %35 = tpu.matmul %33, %34, %cst_20 {dimension_numbers = #tpu.dot_dimension_numbers<[1], [0], [0], [1], [0, 0, 1, 1], [], []>} : vector<8x128xbf16>, vector<128x128xbf16>, vector<8x128xf32> -> vector<8x128xf32>
    %c0_21 = arith.constant 0 : index
    %c0_22 = arith.constant 0 : index
    %36 = vector.load %arg9[%c0_21, %c0_22] : memref<1x128xf32, #tpu.memory_space<vmem>>, vector<1x128xf32>
    %37 = vector.broadcast %36 : vector<1x128xf32> to vector<8x128xf32>
    %38 = arith.addf %35, %37 : vector<8x128xf32>
    %c0_23 = arith.constant 0 : index
    %c0_24 = arith.constant 0 : index
    %39 = vector.load %arg10[%c0_23, %c0_24] : memref<8x128xf32, #tpu.memory_space<vmem>>, vector<8x128xf32>
    tpu.vector_store %arg10[%c0_23, %c0_24], %38 {strides = array<i32>} : memref<8x128xf32, #tpu.memory_space<vmem>>, vector<8x128xf32>,
    return
  }
  func.func @transform_0(%arg0: i32) -> (i32, i32) {
    %c0_i32 = arith.constant 0 : i32
    %c0_i32_0 = arith.constant 0 : i32
    return %arg0, %c0_i32 : i32, i32
  }
  func.func @transform_1(%arg0: i32) -> (i32, i32) {
    %c0_i32 = arith.constant 0 : i32
    %c0_i32_0 = arith.constant 0 : i32
    %c0_i32_1 = arith.constant 0 : i32
    return %c0_i32, %c0_i32_0 : i32, i32
  }
  func.func @transform_2(%arg0: i32) -> (i32, i32) {
    %c0_i32 = arith.constant 0 : i32
    %c0_i32_0 = arith.constant 0 : i32
    %c0_i32_1 = arith.constant 0 : i32
    return %c0_i32, %c0_i32_0 : i32, i32
  }
  func.func @transform_3(%arg0: i32) -> (i32, i32) {
    %c0_i32 = arith.constant 0 : i32
    %c0_i32_0 = arith.constant 0 : i32
    %c0_i32_1 = arith.constant 0 : i32
    return %c0_i32, %c0_i32_0 : i32, i32
  }
  func.func @transform_4(%arg0: i32) -> (i32, i32) {
    %c0_i32 = arith.constant 0 : i32
    %c0_i32_0 = arith.constant 0 : i32
    %c0_i32_1 = arith.constant 0 : i32
    return %c0_i32, %c0_i32_0 : i32, i32
  }
  func.func @transform_5(%arg0: i32) -> (i32, i32) {
    %c0_i32 = arith.constant 0 : i32
    %c0_i32_0 = arith.constant 0 : i32
    %c0_i32_1 = arith.constant 0 : i32
    return %c0_i32, %c0_i32_0 : i32, i32
  }
  func.func @transform_6(%arg0: i32) -> (i32, i32) {
    %c0_i32 = arith.constant 0 : i32
    %c0_i32_0 = arith.constant 0 : i32
    %c0_i32_1 = arith.constant 0 : i32
    return %c0_i32, %c0_i32_0 : i32, i32
  }
  func.func @transform_7(%arg0: i32) -> (i32, i32) {
    %c0_i32 = arith.constant 0 : i32
    %c0_i32_0 = arith.constant 0 : i32
    %c0_i32_1 = arith.constant 0 : i32
    return %c0_i32, %c0_i32_0 : i32, i32
  }
  func.func @transform_8(%arg0: i32) -> (i32, i32) {
    %c0_i32 = arith.constant 0 : i32
    %c0_i32_0 = arith.constant 0 : i32
    %c0_i32_1 = arith.constant 0 : i32
    return %c0_i32, %c0_i32_0 : i32, i32
  }
  func.func @transform_9(%arg0: i32) -> (i32, i32) {
    %c0_i32 = arith.constant 0 : i32
    %c0_i32_0 = arith.constant 0 : i32
    return %arg0, %c0_i32 : i32, i32
  }
}

</mosaic_0001>

<bundles_post_ra>
// kernel: reg_model_forward.1
= control target key start
LH: loop header
LB: loop body
LE: loop exit
PB: predicated region body
PF: predicated region fallthrough
CT: control target
= control target key end

     0   :  { %s765_s1 = inlined_call_operand.vmem [shape: bf16[128,128], index: 1, kind: input, shape index: {}]   ;;  %s766_s2 = inlined_call_operand.vmem [shape: f32[1,128], index: 2, kind: input, shape index: {}]   ;;  %s767_s0 = inlined_call_operand.vmem [shape: bf16[8,128], index: 0, kind: input, shape index: {}]   ;;  %s768_s4 = inlined_call_operand.vmem [shape: f32[1,128], index: 4, kind: input, shape index: {}]   ;;  %s769_s3 = inlined_call_operand.vmem [shape: bf16[128,128], index: 3, kind: input, shape index: {}]   ;;  %s770_s6 = inlined_call_operand.vmem [shape: f32[1,128], index: 6, kind: input, shape index: {}]   ;;  %s771_s5 = inlined_call_operand.vmem [shape: bf16[128,128], index: 5, kind: input, shape index: {}]   ;;  %s772_s8 = inlined_call_operand.vmem [shape: f32[1,128], index: 8, kind: input, shape index: {}]   ;;  %s773_s7 = inlined_call_operand.vmem [shape: bf16[128,128], index: 7, kind: input, shape index: {}]   ;;  %s774_s9 = inlined_call_operand.vmem [shape: f32[8,128], index: 9, kind: output, shape index: {}]  }
   0x1   :  { %v560_v0 = vld [vmem:[%s765_s1 + $0x38] sm:$0xff]  ;;  %v559_v1 = vld [vmem:[%s765_s1 + $0x30] sm:$0xff]  ;;  %v558_v2 = vld [vmem:[%s765_s1 + $0x28] sm:$0xff] }
   0x2   :  { %101 = vmatpush.bf16.msra.mxu0 %v560_v0  ;;  %v557_v3 = vld [vmem:[%s765_s1 + $0x20] sm:$0xff]  ;;  %v556_v4 = vld [vmem:[%s765_s1 + $0x18] sm:$0xff]  ;;  %v555_v5 = vld [vmem:[%s765_s1 + $0x10] sm:$0xff] }
   0x3   :  { %v554_v6 = vld [vmem:[%s765_s1 + $0x8] sm:$0xff]  ;;  %v553_v7 = vld [vmem:[%s765_s1] sm:$0xff]  ;;  %v568_v9 = vld [vmem:[%s769_s3 + $0x38] sm:$0xff] }
   0x4   :  { %v32_v8 = vld [vmem:[%s767_s0] sm:$0xf]  ;;  %202 = vmatpush.bf16.msra.mxu1 %v568_v9  ;;  %v567_v10 = vld [vmem:[%s769_s3 + $0x30] sm:$0xff]  ;;  %v566_v11 = vld [vmem:[%s769_s3 + $0x28] sm:$0xff] }
   0x5   :  { %v565_v12 = vld [vmem:[%s769_s3 + $0x20] sm:$0xff]  ;;  %v564_v13 = vld [vmem:[%s769_s3 + $0x18] sm:$0xff]  ;;  %v563_v14 = vld [vmem:[%s769_s3 + $0x10] sm:$0xff] }
   0x6   :  { %102 = vmatpush.bf16.msra.mxu0 %v559_v1  ;;  %v562_v15 = vld [vmem:[%s769_s3 + $0x8] sm:$0xff]  ;;  %v561_v16 = vld [vmem:[%s769_s3] sm:$0xff]  ;;  %v576_v35 = vld [vmem:[%s771_s5 + $0x38] sm:$0xff] }
   0x7   :  { %v585_v17 = vld [vmem:[%s766_s2] ss:$0 sm:$0xff]  ;;  %303 = vmatpush.bf16.msra.mxu2 %v576_v35  ;;  %v575_v36 = vld [vmem:[%s771_s5 + $0x30] sm:$0xff]  ;;  %v574_v37 = vld [vmem:[%s771_s5 + $0x28] sm:$0xff] }
   0x8   :  { %203 = vmatpush.bf16.msra.mxu1 %v567_v10  ;;  %v573_v38 = vld [vmem:[%s771_s5 + $0x20] sm:$0xff]  ;;  %v572_v39 = vld [vmem:[%s771_s5 + $0x18] sm:$0xff]  ;;  %v571_v40 = vld [vmem:[%s771_s5 + $0x10] sm:$0xff] }
   0x9   :  { %v570_v41 = vld [vmem:[%s771_s5 + $0x8] sm:$0xff]  ;;  %v569_v42 = vld [vmem:[%s771_s5] sm:$0xff]  ;;  %v584_v61 = vld [vmem:[%s773_s7 + $0x38] sm:$0xff] }
   0xa   :  { %103 = vmatpush.bf16.msra.mxu0 %v558_v2  ;;  %v586_v43 = vld [vmem:[%s768_s4] ss:$0 sm:$0xff]  ;;  %404 = vmatpush.bf16.msra.mxu3 %v584_v61  ;;  %v583_v62 = vld [vmem:[%s773_s7 + $0x30] sm:$0xff]  ;;  %v582_v63 = vld [vmem:[%s773_s7 + $0x28] sm:$0xff] }
   0xb   :  { %304 = vmatpush.bf16.msra.mxu2 %v575_v36  ;;  %v581_v0 = vld [vmem:[%s773_s7 + $0x20] sm:$0xff]  ;;  %v580_v1 = vld [vmem:[%s773_s7 + $0x18] sm:$0xff]  ;;  %v579_v2 = vld [vmem:[%s773_s7 + $0x10] sm:$0xff] }
   0xc   :  { %204 = vmatpush.bf16.msra.mxu1 %v566_v11 }
   0xe   :  { %104 = vmatpush.bf16.msra.mxu0 %v557_v3  ;;  %405 = vmatpush.bf16.msra.mxu3 %v583_v62  ;;  %v578_v3 = vld [vmem:[%s773_s7 + $0x8] sm:$0xff] }
   0xf   :  { %305 = vmatpush.bf16.msra.mxu2 %v574_v37 }
  0x10   :  { %205 = vmatpush.bf16.msra.mxu1 %v565_v12 }
  0x12   :  { %105 = vmatpush.bf16.msra.mxu0 %v556_v4  ;;  %406 = vmatpush.bf16.msra.mxu3 %v582_v63  ;;  %v577_v4 = vld [vmem:[%s773_s7] sm:$0xff] }
  0x13   :  { %306 = vmatpush.bf16.msra.mxu2 %v573_v38 }
  0x14   :  { %206 = vmatpush.bf16.msra.mxu1 %v564_v13 }
  0x16   :  { %106 = vmatpush.bf16.msra.mxu0 %v555_v5  ;;  %407 = vmatpush.bf16.msra.mxu3 %v581_v0  ;;  %v587_v5 = vld [vmem:[%s770_s6] ss:$0 sm:$0xff] }
  0x17   :  { %307 = vmatpush.bf16.msra.mxu2 %v572_v39 }
  0x18   :  { %207 = vmatpush.bf16.msra.mxu1 %v563_v14 }
  0x1a   :  { %107 = vmatpush.bf16.msra.mxu0 %v554_v6  ;;  %408 = vmatpush.bf16.msra.mxu3 %v580_v1 }
  0x1b   :  { %308 = vmatpush.bf16.msra.mxu2 %v571_v40 }
  0x1c   :  { %208 = vmatpush.bf16.msra.mxu1 %v562_v15 }
  0x1e   :  { %108 = vmatpush.bf16.msra.mxu0 %v553_v7  ;;  %409 = vmatpush.bf16.msra.mxu3 %v579_v2 }
  0x1f   :  { %309 = vmatpush.bf16.msra.mxu2 %v570_v41 }
  0x20   :  { %209 = vmatpush.bf16.msra.mxu1 %v561_v16 }
  0x21   :  { %109 = vmatmul.bf16.vlgmr.msra.gmra.mxu0 %v32_v8 }
  0x22   :  { %410 = vmatpush.bf16.msra.mxu3 %v578_v3 }
  0x23   :  { %310 = vmatpush.bf16.msra.mxu2 %v569_v42 }
  0x26   :  { %411 = vmatpush.bf16.msra.mxu3 %v577_v4 }
  0x9e   :  { %v110_v18 = vpop.f32.mrf.mxu0 }
  0x9f   :  { %v111_v19 = vadd.f32 %v585_v17, %v110_v18 }
  0xa1   :  { %v454_v20 = vmul.f32 -1.442695, %v111_v19 }
  0xa3   :  { %589 = vpow2.f32 %v454_v20 }
  0xa6   :  { %v112_v21 = vpop.f32.mrf.mxu0 }
  0xa9   :  { %v590_v22 = vpop.eup %589 }
  0xaa   :  { %v117_v23 = vadd.f32 1.0, %v590_v22 }
  0xac   :  { %591 = vrcp.f32 %v117_v23  ;;  %v129_v27 = vand.u32 2147483648, %v117_v23  ;;  %v127_v29 = vand.u32 2147483647, %v117_v23  ;;  %vm123_vm1 = vweird.f32 %v117_v23 }
  0xae   :  { %v130_v31 = vor.u32 1.1754944e-38, %v129_v27  ;;  %vm128_vm3 = vcmp.eq.f32.partialorder %v127_v29, 8.507059e+37 }
  0xb2   :  { %v592_v24 = vpop.eup %591 }
  0xb3   :  { %v119_v25 = vmul.f32 %v592_v24, %v117_v23  ;;  %vm124_vm0 = vweird.f32 %v592_v24  ;;  %v588_v23 = vld [vmem:[%s772_s8] ss:$0 sm:$0xff] }
  0xb4   :  { %vm125_vm2 = vmor %vm123_vm1, %vm124_vm0 }
  0xb5   :  { %v120_v26 = vsub.f32 1.0, %v119_v25 }
  0xb7   :  { %v121_v28 = vmul.f32 %v592_v24, %v120_v26 }
  0xb9   :  { %v122_v30 = vadd.f32 %v592_v24, %v121_v28 }
  0xbb   :  { %v126_v32 = vsel %vm125_vm2, %v592_v24, %v122_v30 }
  0xbc   :  { %v131_v33 = vsel %vm128_vm3, %v130_v31, %v126_v32 }
  0xbd   :  { %v133_v34 = vpack.c.bf16 %v131_v33, %v131_v33 }
  0xbf   :  { %210 = vmatmul.bf16.vlgmr.msra.gmra.mxu1 %v133_v34 }
 0x13c   :  { %v211_v44 = vpop.f32.mrf.mxu1 }
 0x13d   :  { %v212_v45 = vadd.f32 %v586_v43, %v211_v44 }
 0x13f   :  { %v487_v46 = vmul.f32 -1.442695, %v212_v45 }
 0x141   :  { %593 = vpow2.f32 %v487_v46 }
 0x144   :  { %v213_v47 = vpop.f32.mrf.mxu1 }
 0x147   :  { %v594_v48 = vpop.eup %593 }
 0x148   :  { %v218_v49 = vadd.f32 1.0, %v594_v48 }
 0x14a   :  { %595 = vrcp.f32 %v218_v49  ;;  %v230_v53 = vand.u32 2147483648, %v218_v49  ;;  %v228_v55 = vand.u32 2147483647, %v218_v49  ;;  %vm224_vm5 = vweird.f32 %v218_v49 }
 0x14c   :  { %v231_v57 = vor.u32 1.1754944e-38, %v230_v53  ;;  %vm229_vm7 = vcmp.eq.f32.partialorder %v228_v55, 8.507059e+37 }
 0x150   :  { %v596_v50 = vpop.eup %595 }
 0x151   :  { %v220_v51 = vmul.f32 %v596_v50, %v218_v49  ;;  %vm225_vm4 = vweird.f32 %v596_v50 }
 0x152   :  { %vm226_vm6 = vmor %vm224_vm5, %vm225_vm4 }
 0x153   :  { %v221_v52 = vsub.f32 1.0, %v220_v51 }
 0x155   :  { %v222_v54 = vmul.f32 %v596_v50, %v221_v52 }
 0x157   :  { %v223_v56 = vadd.f32 %v596_v50, %v222_v54 }
 0x159   :  { %v227_v58 = vsel %vm226_vm6, %v596_v50, %v223_v56 }
 0x15a   :  { %v232_v59 = vsel %vm229_vm7, %v231_v57, %v227_v58 }
 0x15b   :  { %v234_v60 = vpack.c.bf16 %v232_v59, %v232_v59 }
 0x15d   :  { %311 = vmatmul.bf16.vlgmr.msra.gmra.mxu2 %v234_v60 }
 0x1e0   :  { %v312_v6 = vpop.f32.mrf.mxu2 }
 0x1e1   :  { %v313_v7 = vadd.f32 %v587_v5, %v312_v6 }
 0x1e3   :  { %v520_v8 = vmul.f32 -1.442695, %v313_v7 }
 0x1e5   :  { %597 = vpow2.f32 %v520_v8 }
 0x1e8   :  { %v314_v9 = vpop.f32.mrf.mxu2 }
 0x1eb   :  { %v598_v10 = vpop.eup %597 }
 0x1ec   :  { %v319_v11 = vadd.f32 1.0, %v598_v10 }
 0x1ee   :  { %599 = vrcp.f32 %v319_v11  ;;  %v331_v15 = vand.u32 2147483648, %v319_v11  ;;  %v329_v17 = vand.u32 2147483647, %v319_v11  ;;  %vm325_vm9 = vweird.f32 %v319_v11 }
 0x1f0   :  { %v332_v19 = vor.u32 1.1754944e-38, %v331_v15  ;;  %vm330_vm11 = vcmp.eq.f32.partialorder %v329_v17, 8.507059e+37 }
 0x1f4   :  { %v600_v12 = vpop.eup %599 }
 0x1f5   :  { %v321_v13 = vmul.f32 %v600_v12, %v319_v11  ;;  %vm326_vm8 = vweird.f32 %v600_v12 }
 0x1f6   :  { %vm327_vm10 = vmor %vm325_vm9, %vm326_vm8 }
 0x1f7   :  { %v322_v14 = vsub.f32 1.0, %v321_v13 }
 0x1f9   :  { %v323_v16 = vmul.f32 %v600_v12, %v322_v14 }
 0x1fb   :  { %v324_v18 = vadd.f32 %v600_v12, %v323_v16 }
 0x1fd   :  { %v328_v20 = vsel %vm327_vm10, %v600_v12, %v324_v18 }
 0x1fe   :  { %v333_v21 = vsel %vm330_vm11, %v332_v19, %v328_v20 }
 0x1ff   :  { %v335_v22 = vpack.c.bf16 %v333_v21, %v333_v21 }
 0x201   :  { %412 = vmatmul.bf16.vlgmr.msra.gmra.mxu3 %v335_v22 }
 0x284   :  { %v413_v24 = vpop.f32.mrf.mxu3 }
 0x285   :  { %v414_v25 = vadd.f32 %v588_v23, %v413_v24 }
 0x287   :  { %417 = vst [vmem:[%s774_s9] sm:$0xff] %v414_v25 }
 0x28c   :  { %v415_v26 = vpop.f32.mrf.mxu3 }

</bundles_post_ra>
